<compile_context>
chip_gen: v6e
topology: v6e:2x2x1
jax: 0.10.0
libtpu: 0.0.40
codegen_flags: <defaults>
</compile_context>

<pallas_src>
import functools

import jax
import jax.numpy as jnp
from jax.experimental import pallas as pl
from jax.experimental.pallas import tpu as pltpu


def _mymodel_kernel(d_ref, w_ref, o_ref):
    # One MXU matmul per grid step: (bm, 3L) @ (3L, Ns), f32 accumulate.
    o_ref[...] = jnp.dot(
        d_ref[...], w_ref[...], preferred_element_type=jnp.float32
    ).astype(o_ref.dtype)


@functools.partial(
    jax.jit,
    static_argnames=("ERP_length", "block_m", "compute_dtype", "out_dtype"),
)
def mymodel_forward(D, R_stack, S_stack, *, ERP_length, block_m=8192,
                    compute_dtype=jnp.bfloat16, out_dtype=None):
    """D: (B, N, 3*L), R_stack: (3, C, L), S_stack: (3, Ns, C) -> (B, N, Ns).

    R_stack / S_stack are the nn.Linear weights in PyTorch (out, in) layout,
    stacked over the three (R_i, S_i) pairs.
    """
    B, N, L3 = D.shape
    L = ERP_length
    assert L3 == 3 * L
    Ns = S_stack.shape[1]
    M = B * N
    out_dtype = D.dtype if out_dtype is None else out_dtype

    # Algebraic fold in the (jitted) wrapper — tiny contraction over C:
    #   W_i = S_i @ R_i -> (Ns, L);  Wt = concat_i(W_i, axis=L).T -> (3L, Ns)
    W = jnp.einsum("ksc,kcl->ksl", S_stack, R_stack)        # (3, Ns, L), f32
    Wt = jnp.transpose(W, (0, 2, 1)).reshape(3 * L, Ns)     # (3L, Ns)
    Wt = Wt.astype(compute_dtype)

    # bf16 input halves the dominant HBM read; free reshape of leading dims.
    D2 = D.reshape(M, 3 * L).astype(compute_dtype)

    # M tile: large enough that per-step DMA >> ~0.35 us fixed step overhead;
    # partial last tile is handled by Pallas (writeback clamped to bounds).
    bm = M if M <= block_m else block_m
    grid_m = pl.cdiv(M, bm)

    in_bytes = jnp.dtype(compute_dtype).itemsize
    out_bytes = jnp.dtype(out_dtype).itemsize
    cost = pl.CostEstimate(
        flops=2 * M * L3 * Ns,
        bytes_accessed=M * L3 * in_bytes + L3 * Ns * in_bytes + M * Ns * out_bytes,
        transcendentals=0,
    )

    out = pl.pallas_call(
        _mymodel_kernel,
        out_shape=jax.ShapeDtypeStruct((M, Ns), out_dtype),
        grid_spec=pl.GridSpec(
            grid=(grid_m,),
            in_specs=[
                pl.BlockSpec((bm, L3), lambda i: (i, 0)),   # D rows tile
                pl.BlockSpec((L3, Ns), lambda i: (0, 0)),   # folded weight (resident)
            ],
            # True-Ns output (full last dim) — no pad, no post-slice copy.
            out_specs=pl.BlockSpec((bm, Ns), lambda i: (i, 0)),
        ),
        compiler_params=pltpu.CompilerParams(
            dimension_semantics=("parallel",),
            # Comfortable on all generations (v7x: 64 MiB physical, v5e/v6e:
            # 128 MiB); keeps v5e's 16 MiB default from limiting pipelining.
            vmem_limit_bytes=32 * 1024 * 1024,
        ),
        cost_estimate=cost,
    )(D2, Wt)

    return out.reshape(B, N, Ns)


if __name__ == "__main__":
    # Small shapes consistent with the module's forward:
    #   num_channels=4, ERP_length=16, num_sensors=32, D: (B=2, N=8, 3*L=48)
    num_channels = 4
    ERP_length = 16
    num_sensors = 32
    B, N = 2, 8

    key = jax.random.PRNGKey(0)
    kD, kR, kS = jax.random.split(key, 3)

    D = jax.random.normal(kD, (B, N, 3 * ERP_length), dtype=jnp.float32)
    # nn.Linear weight layout: (out_features, in_features)
    R_stack = 0.1 * jax.random.normal(
        kR, (3, num_channels, ERP_length), dtype=jnp.float32
    )
    S_stack = 0.1 * jax.random.normal(
        kS, (3, num_sensors, num_channels), dtype=jnp.float32
    )

    y = mymodel_forward(D, R_stack, S_stack, ERP_length=ERP_length)
    y = jax.block_until_ready(y)

    # Pure-JAX reference (matches the PyTorch forward op-for-op, f32).
    def ref(D, R_stack, S_stack):
        outs = []
        for i in range(3):
            Di = D[:, :, i * ERP_length:(i + 1) * ERP_length]
            yi = jnp.einsum("bnl,cl->bnc", Di, R_stack[i])
            yi = jnp.einsum("bnc,sc->bns", yi, S_stack[i])
            outs.append(yi)
        return outs[0] + outs[1] + outs[2]

    y_ref = ref(D, R_stack, S_stack)
    assert y.shape == (B, N, num_sensors)
    # Looser tolerance: kernel path casts D / folded weight to bf16
    # (f32 accumulation), per the performance review.
    assert jnp.allclose(y.astype(jnp.float32), y_ref, atol=3e-2, rtol=3e-2)

    print("KERNEL_OK")
</pallas_src>

<mosaic_0001>
module attributes {stable_mosaic.version = 11 : i64} {
  func.func @_mymodel_kernel(%arg0: i32, %arg1: memref<16x48xbf16, #tpu.memory_space<vmem>>, %arg2: memref<48x32xbf16, #tpu.memory_space<vmem>>, %arg3: memref<16x32xf32, #tpu.memory_space<vmem>>) attributes {dimension_semantics = [#tpu.dimension_semantics<parallel>], iteration_bounds = array<i64: 1>, scalar_prefetch = 0 : i64, scratch_operands = 0 : i64, tpu.core_type = #tpu.core_type<tc>, window_params = [{transform_indices = @transform_0, window_bounds = array<i64: 16, 48>}, {pipeline_mode = #tpu.pipeline_mode<synchronous>, transform_indices = @transform_1, window_bounds = array<i64: 48, 32>}, {transform_indices = @transform_2, window_bounds = array<i64: 16, 32>}]} {
    %c0 = arith.constant 0 : index
    %c0_0 = arith.constant 0 : index
    %0 = vector.load %arg1[%c0, %c0_0] : memref<16x48xbf16, #tpu.memory_space<vmem>>, vector<16x48xbf16>
    %c0_1 = arith.constant 0 : index
    %c0_2 = arith.constant 0 : index
    %1 = vector.load %arg2[%c0_1, %c0_2] : memref<48x32xbf16, #tpu.memory_space<vmem>>, vector<48x32xbf16>
    %cst = arith.constant dense<0.000000e+00> : vector<16x32xf32>
    %2 = tpu.matmul %0, %1, %cst {dimension_numbers = #tpu.dot_dimension_numbers<[1], [0], [0], [1], [0, 0, 1, 1], [], []>} : vector<16x48xbf16>, vector<48x32xbf16>, vector<16x32xf32> -> vector<16x32xf32>
    %c0_3 = arith.constant 0 : index
    %c0_4 = arith.constant 0 : index
    %3 = vector.load %arg3[%c0_3, %c0_4] : memref<16x32xf32, #tpu.memory_space<vmem>>, vector<16x32xf32>
    tpu.vector_store %arg3[%c0_3, %c0_4], %2 {strides = array<i32>} : memref<16x32xf32, #tpu.memory_space<vmem>>, vector<16x32xf32>,
    return
  }
  func.func @transform_0(%arg0: i32) -> (i32, i32) {
    %c0_i32 = arith.constant 0 : i32
    %c0_i32_0 = arith.constant 0 : i32
    return %arg0, %c0_i32 : i32, i32
  }
  func.func @transform_1(%arg0: i32) -> (i32, i32) {
    %c0_i32 = arith.constant 0 : i32
    %c0_i32_0 = arith.constant 0 : i32
    %c0_i32_1 = arith.constant 0 : i32
    return %c0_i32, %c0_i32_0 : i32, i32
  }
  func.func @transform_2(%arg0: i32) -> (i32, i32) {
    %c0_i32 = arith.constant 0 : i32
    %c0_i32_0 = arith.constant 0 : i32
    return %arg0, %c0_i32 : i32, i32
  }
}

</mosaic_0001>

<bundles_post_ra>
// kernel: mymodel_forward.1
= control target key start
LH: loop header
LB: loop body
LE: loop exit
PB: predicated region body
PF: predicated region fallthrough
CT: control target
= control target key end

     0   :  { %v158_v1 = vmov 0.0   ;;  %vm159_vm0 = vmmov 0   ;;  %s193_s0 = inlined_call_operand.vmem [shape: bf16[16,48], index: 0, kind: input, shape index: {}]   ;;  %s194_s1 = inlined_call_operand.vmem [shape: bf16[48,32], index: 1, kind: input, shape index: {}]   ;;  %s195_s2 = inlined_call_operand.hbm [shape: f32[16,32], index: 2, kind: output, shape index: {}]  }
   0x1   :  { %v132_v0 = vld [vmem:[%s194_s1 + $0x10] sm:$0xff]   ;;  %117 = vmatprep.subr.bf16.mxu0 %v158_v1  ;;  %v133_v2 = vld [vmem:[%s194_s1 + $0x8] sm:$0xff]   ;;  %123 = vmatprep.mubr.msk.bf16.mxu0 %vm159_vm0, %v158_v1 }
   0x2   :  { %118 = vmatpush3.bf16.msra.mxu0 %v132_v0 }
   0x3   :  { %119 = vmatprep.subr.bf16.mxu0 %v158_v1 }
   0x4   :  { %7 = vsyncpa [#allocation3], 0  ;;  %v134_v3 = vld [vmem:[%s194_s1] sm:$0xff]   ;;  %vm44_vm1 = vcmask 392192   ;;  %vm89_vm2 = vcmask 261120   ;;  %s160_s17 = smov [#allocation2]  }
   0x5   :  { %v135_v4 = vld [vmem:[%s193_s0] sm:$0xff]   ;;  %s97_s18 = sshll.u32 %s160_s17, 4  ;;  %s98_s18 = int_to_ptr.vmem [resolvable:$true] %s97_s18 }
   0x6   :  { %120 = vmatpush3.bf16.msra.mxu0 %v133_v2  ;;  %s136_s19 = scalar_lea.vmem %s98_s18, 256  ;;  %p141_p1 = scmp.lt.s32.totalorder %s98_s18, %s98_s18 }
   0x7   :  { %121 = vmatprep.subr.bf16.mxu0 %v158_v1  ;;  %p137_p0 = scmp.ne.s32.totalorder %s98_s18, %s136_s19  ;;  %p142_p2 = scmp.lt.s32.totalorder %s136_s19, %s136_s19 }
   0x9   :  { %p143_p3 = por %p142_p2, %p141_p1 }
   0xa   :  { %122 = vmatpush3.bf16.msra.mxu0 %v134_v3 }
   0xb   :  { %p144_p4 = pnand %p143_p3, %p137_p0 }
   0xd   :  { %124 = vmatmul.mubr.msk.bf16.vlgmr.msra.gmra.mxu0 %vm44_vm1, %v135_v4 }
  0xcd   :  { %v82_v5 = vpop.f32.mrf.mxu0 }
  0xce   :  { %90 = vst.msk [vmem:[#allocation2] sm:$0xff] %vm89_vm2, %v82_v5 }
  0xcf   :  { %v125_v6 = vpop.f32.mrf.mxu0 }
  0xd1   :  { %v85_v7 = vpop.f32.mrf.mxu0 }
  0xd2   :  { %91 = vst.msk [vmem:[#allocation2 + $0x8] sm:$0xff] %vm89_vm2, %v85_v7 }
  0xd3   :  { %v126_v8 = vpop.f32.mrf.mxu0 }
  0xd4   :  { %147 = shalt.err (!%p144_p4)
}
  0xd5   :  { %s161_s0 = smov 128   ;;  %s162_s1 = smov 8  }
  0xd6   :  { %103 = dma.vmem_to_hbm [thread:$0]  %s98_s18, 256, %s195_s2, [#allocation3], %s161_s0, %s161_s0, %s162_s1  }
  0xd7   :  { %156 = dma.done.wait [#allocation3], 256  }
  0xd8   :  { %157 = vsyncadd [#allocation3], 4294967040 }
  0xd9   :  { %107 = vsyncpa [#allocation3], 1 }

</bundles_post_ra>
